<compile_context>
chip_gen: v5e
topology: v5e:2x2
jax: 0.10.0
libtpu: 0.0.40
codegen_flags: <defaults>
</compile_context>

<pallas_src>
import jax
import jax.numpy as jnp
from jax.experimental import pallas as pl
from jax.experimental.pallas import tpu as pltpu


def _fused_kernel(x2_ref, b_ref, x1_ref, w_ref, o_ref):
    # x2_ref: SMEM (1, 1)   b_ref: SMEM (1,)
    # x1_ref: VMEM (1, C)   w_ref: VMEM (1, C)   o_ref: VMEM (1, 1, C)
    x2_s = x2_ref[0, 0]
    b_s = b_ref[0]
    x1 = x1_ref[...].astype(jnp.float32)
    w = w_ref[...].astype(jnp.float32)
    # v5 + v4@x1 + b  ==  x1*w + x2*x1 + b  ==  x1*(w + x2) + b   (VPU only)
    res = x1 * (w + x2_s) + b_s
    o_ref[0] = res.astype(o_ref.dtype)


def model_forward(x1, x2, weight, bias):
    """Returns v6.reshape((1,) + x1.shape) == (1, 1, C)."""
    assert x1.ndim == 2 and x1.shape[0] == 1, "final reshape requires x1 = (1, C)"
    assert x2.size == 1, "v4 @ x1 is only shape-consistent if x2 has one element"
    n, c = x1.shape  # (1, 2)

    out = pl.pallas_call(
        _fused_kernel,
        out_shape=jax.ShapeDtypeStruct((1, n, c), x1.dtype),
        in_specs=[
            pl.BlockSpec(memory_space=pltpu.MemorySpace.SMEM),   # x2 (1,1) scalar
            pl.BlockSpec(memory_space=pltpu.MemorySpace.SMEM),   # bias (1,) scalar
            pl.BlockSpec(memory_space=pltpu.MemorySpace.VMEM),   # x1
            pl.BlockSpec(memory_space=pltpu.MemorySpace.VMEM),   # weight
        ],
        out_specs=pl.BlockSpec(memory_space=pltpu.MemorySpace.VMEM),
        cost_estimate=pl.CostEstimate(flops=4, transcendentals=0, bytes_accessed=40),
    )(x2, bias, x1, weight)

    return out  # already (1, 1, C); no post-kernel reshape


def _reference(x1, x2, weight, bias):
    v1 = x1.reshape(1, -1)
    v4 = x2.reshape(1, -1)
    v5 = v1 * weight
    v6 = v5 + v4 @ x1 + bias.reshape(1, 1)
    return v6.reshape((1,) + x1.shape)


if __name__ == "__main__":
    key = jax.random.PRNGKey(0)
    k1, k2, kw, kb = jax.random.split(key, 4)

    # Inputs (see shape note above: x2 must have exactly 1 element).
    x1 = jax.random.normal(k1, (1, 2), dtype=jnp.float32)
    x2 = jax.random.normal(k2, (1, 1), dtype=jnp.float32)

    # Deterministic nn.Linear(2, 1) init: U(-1/sqrt(in), 1/sqrt(in)).
    bound = 1.0 / (2.0 ** 0.5)
    weight = jax.random.uniform(kw, (1, 2), jnp.float32, -bound, bound)
    bias = jax.random.uniform(kb, (1,), jnp.float32, -bound, bound)

    out = model_forward(x1, x2, weight, bias)
    out = jax.block_until_ready(out)

    ref = _reference(x1, x2, weight, bias)
    assert out.shape == (1, 1, 2), out.shape
    assert out.dtype == x1.dtype, out.dtype
    assert jnp.allclose(out, ref, atol=1e-5, rtol=1e-5), (out, ref)

    print("KERNEL_OK")
</pallas_src>

<mosaic_0001>
module attributes {stable_mosaic.version = 11 : i64} {
  func.func @_fused_kernel(%arg0: memref<1x1xf32, #tpu.memory_space<smem>>, %arg1: memref<1xf32, #tpu.memory_space<smem>>, %arg2: memref<1x2xf32, #tpu.memory_space<vmem>>, %arg3: memref<1x2xf32, #tpu.memory_space<vmem>>, %arg4: memref<1x1x2xf32, #tpu.memory_space<vmem>>) attributes {dimension_semantics = [], scalar_prefetch = 0 : i64, scratch_operands = 0 : i64, tpu.core_type = #tpu.core_type<tc>} {
    %c0 = arith.constant 0 : index
    %c0_0 = arith.constant 0 : index
    %0 = memref.load %arg0[%c0, %c0_0] : memref<1x1xf32, #tpu.memory_space<smem>>
    %c0_1 = arith.constant 0 : index
    %1 = memref.load %arg1[%c0_1] : memref<1xf32, #tpu.memory_space<smem>>
    %c0_2 = arith.constant 0 : index
    %c0_3 = arith.constant 0 : index
    %2 = vector.load %arg2[%c0_2, %c0_3] : memref<1x2xf32, #tpu.memory_space<vmem>>, vector<1x2xf32>
    %c0_4 = arith.constant 0 : index
    %c0_5 = arith.constant 0 : index
    %3 = vector.load %arg3[%c0_4, %c0_5] : memref<1x2xf32, #tpu.memory_space<vmem>>, vector<1x2xf32>
    %4 = vector.broadcast %0 : f32 to vector<1x2xf32>
    %5 = arith.addf %3, %4 : vector<1x2xf32>
    %6 = arith.mulf %2, %5 : vector<1x2xf32>
    %7 = vector.broadcast %1 : f32 to vector<1x2xf32>
    %8 = arith.addf %6, %7 : vector<1x2xf32>
    %c0_6 = arith.constant 0 : index
    %c0_7 = arith.constant 0 : index
    %c0_8 = arith.constant 0 : index
    %9 = vector.load %arg4[%c0_6, %c0_7, %c0_8] : memref<1x1x2xf32, #tpu.memory_space<vmem>>, vector<1x1x2xf32>
    %10 = vector.shape_cast %9 : vector<1x1x2xf32> to vector<1x2xf32>
    %11 = vector.shape_cast %8 : vector<1x2xf32> to vector<1x1x2xf32>
    tpu.vector_store %arg4[%c0_6, %c0_7, %c0_8], %11 {strides = array<i32>} : memref<1x1x2xf32, #tpu.memory_space<vmem>>, vector<1x1x2xf32>,
    return
  }
}

</mosaic_0001>

<bundles_post_ra>
// kernel: tpu_custom_call.1
= control target key start
LH: loop header
LB: loop body
LE: loop exit
PB: predicated region body
PF: predicated region fallthrough
CT: control target
= control target key end

     0   :  { %s115_s0 = inlined_call_operand.<no memory space> [shape: f32[1,1], index: 0, kind: input, shape index: {}]   ;;  %s116_s1 = inlined_call_operand.<no memory space> [shape: f32[1], index: 1, kind: input, shape index: {}]   ;;  %s117_s2 = inlined_call_operand.vmem [shape: f32[1,2], index: 2, kind: input, shape index: {}]   ;;  %s118_s3 = inlined_call_operand.vmem [shape: f32[1,2], index: 3, kind: input, shape index: {}]   ;;  %s119_s4 = inlined_call_operand.hbm [shape: f32[1,1,2], index: 4, kind: output, shape index: {}]  }
   0x1   :  { %v22_v0 = vld [vmem:[%s117_s2] sm:$0x1]  ;;  %v24_v2 = vstv %s115_s0 }
   0x2   :  { %v23_v1 = vld [vmem:[%s118_s3] sm:$0x1] }
   0x3   :  { %v25_v3 = vadd.f32 %v24_v2, %v23_v1 }
   0x4   :  { %11 = vsyncpa [#allocation5], 0  ;;  %v27_v4 = vstv %s116_s1  ;;  %s74_s23 = smov [#allocation4]   ;;  %s38_s2 = sshll.u32 %s119_s4, 4  ;;  %vm29_vm0 = vcmask 8192   ;;  %s39_s2 = int_to_ptr.hbm [resolvable:$true] %s38_s2 }
   0x5   :  { %s36_s24 = sshll.u32 %s74_s23, 4  ;;  %v26_v5 = vmul.f32 %v25_v3, %v22_v0  ;;  %s37_s24 = int_to_ptr.vmem [resolvable:$true] %s36_s24 }
   0x7   :  { %v28_v6 = vadd.f32 %v27_v4, %v26_v5 }
   0x9   :  { %30 = vst.msk [vmem:[#allocation4] sm:$0x1] %vm29_vm0, %v28_v6 }
   0xa   :  { %41 = dma.vmem_to_hbm [thread:$0]  %s37_s24, 16, %s39_s2, [#allocation5]  }
   0xb   :  { %72 = dma.done.wait [#allocation5], 16  }
   0xc   :  { %73 = vsyncadd [#allocation5], 4294967280 }
   0xd   :  { %46 = vsyncpa [#allocation5], 1 }

</bundles_post_ra>
